<compile_context>
chip_gen: v7x
topology: tpu7x:2x2x1
jax: 0.10.0
libtpu: 0.0.40
codegen_flags: <defaults>
</compile_context>

<pallas_src>
import jax
import jax.numpy as jnp
from jax.experimental import pallas as pl
from jax.experimental.pallas import tpu as pltpu


# ------------------------------ tiling helpers ------------------------------ #

def _pick_tile(dim, preferred, align):
    """Largest multiple of `align` that divides `dim`, capped at `preferred`.
    Falls back to the full dim (always a legal block extent)."""
    if dim <= preferred:
        return dim
    t = (preferred // align) * align
    while t >= align:
        if dim % t == 0:
            return t
        t -= align
    return dim


def _pick_group_tile(G, M, N, itemsize, budget_bytes=4 << 20):
    """Group-tile for the batched grouped kernel.
    Returns 0 if no legal tile fits the budget (caller falls back to 1 group/step)."""
    per_group = max(M * N * itemsize, 1)
    max_g = max(1, budget_bytes // per_group)
    if G <= max_g:
        return G
    t = (min(max_g, G) // 8) * 8
    while t >= 8:
        if G % t == 0:
            return t
        t -= 8
    return 0


# ------------------------------ Pallas kernels ------------------------------ #

def _mm_bias_kernel(x_ref, w_ref, b_ref, o_ref, acc_ref):
    # groups==1 channel-first, tiled K: (tm, tk) @ (tk, tn), f32 accumulate over k,
    # bias (1, tn) added once at the last k step.
    k = pl.program_id(2)

    @pl.when(k == 0)
    def _():
        acc_ref[...] = jnp.zeros_like(acc_ref)

    acc_ref[...] += jnp.dot(x_ref[...], w_ref[...],
                            preferred_element_type=jnp.float32)

    @pl.when(k == pl.num_programs(2) - 1)
    def _():
        o_ref[...] = (acc_ref[...] + b_ref[...].astype(jnp.float32)
                      ).astype(o_ref.dtype)


def _mm_bias_single_kernel(x_ref, w_ref, b_ref, o_ref):
    # groups==1 channel-first, single K step: fused dot + bias + store (no scratch).
    o_ref[...] = (
        jnp.dot(x_ref[...], w_ref[...], preferred_element_type=jnp.float32)
        + b_ref[...].astype(jnp.float32)
    ).astype(o_ref.dtype)


def _nc_mm_bias_kernel(wt_ref, x_ref, bt_ref, o_ref, acc_ref):
    # groups==1 channel-last, tiled K: W.T tile (tn, tk) @ x[b] tile (tk, tc),
    # column bias (tn, 1) added once at the last k step.  Output lane dim is C.
    k = pl.program_id(3)

    @pl.when(k == 0)
    def _():
        acc_ref[...] = jnp.zeros_like(acc_ref)

    acc_ref[...] += jnp.dot(wt_ref[...], x_ref[...],
                            preferred_element_type=jnp.float32)

    @pl.when(k == pl.num_programs(3) - 1)
    def _():
        o_ref[...] = (acc_ref[...] + bt_ref[...].astype(jnp.float32)
                      ).astype(o_ref.dtype)


def _nc_mm_bias_single_kernel(wt_ref, x_ref, bt_ref, o_ref):
    # groups==1 channel-last, single K step: fused W.T @ x[b] + column bias.
    o_ref[...] = (
        jnp.dot(wt_ref[...], x_ref[...], preferred_element_type=jnp.float32)
        + bt_ref[...].astype(jnp.float32)
    ).astype(o_ref.dtype)


def _group_batched_mm_bias_kernel(x_ref, w_ref, b_ref, o_ref):
    # grouped channel-first, several groups per grid step:
    # (tb, tg, M) x (tg, M, N) -> (tb, tg, N), bias (tg, N) broadcast over batch.
    acc = jnp.einsum('bgm,gmn->bgn', x_ref[...], w_ref[...],
                     preferred_element_type=jnp.float32)
    o_ref[...] = (acc + b_ref[...].astype(jnp.float32)[None, :, :]
                  ).astype(o_ref.dtype)


def _group_mm_bias_kernel(x_ref, w_ref, b_ref, o_ref):
    # grouped channel-first fallback, one (row-tile, group) per grid step:
    # (tb, M) @ (M, N) + (1, N) -> (tb, N)
    o_ref[...] = (
        jnp.dot(x_ref[...], w_ref[...], preferred_element_type=jnp.float32)
        + b_ref[...].astype(jnp.float32)
    ).astype(o_ref.dtype)


# -------------------------------- wrappers ----------------------------------- #

def conv1d1x1_groups1_cf(x, W, bias):
    """x: (B, C, M), W: (M, N), bias: (1, N) -> (B, C, N)."""
    B, C, M = x.shape
    Mw, N = W.shape
    assert M == Mw
    out_dtype = jnp.promote_types(x.dtype, W.dtype)
    R = B * C
    x2 = x.reshape(R, M)                       # contiguous reshape: no HBM pass
    tm = _pick_tile(R, 256, 8)                 # sublane dim of x/out tiles
    tn = _pick_tile(N, 256, 128)               # lane-dense output tile
    tk = _pick_tile(M, 512, 128)               # reduction tile (last grid axis)
    ksteps = M // tk

    if ksteps == 1:
        # Single reduction step: no accumulator scratch, no k axis.
        out2 = pl.pallas_call(
            _mm_bias_single_kernel,
            out_shape=jax.ShapeDtypeStruct((R, N), out_dtype),
            grid_spec=pltpu.PrefetchScalarGridSpec(
                num_scalar_prefetch=0,
                grid=(R // tm, N // tn),
                in_specs=[
                    pl.BlockSpec((tm, M), lambda i, j: (i, 0)),
                    pl.BlockSpec((M, tn), lambda i, j: (0, j)),
                    pl.BlockSpec((1, tn), lambda i, j: (0, j)),
                ],
                out_specs=pl.BlockSpec((tm, tn), lambda i, j: (i, j)),
            ),
            compiler_params=pltpu.CompilerParams(
                dimension_semantics=("parallel", "parallel")),
        )(x2, W, bias)
        return out2.reshape(B, C, N)

    out2 = pl.pallas_call(
        _mm_bias_kernel,
        out_shape=jax.ShapeDtypeStruct((R, N), out_dtype),
        grid_spec=pltpu.PrefetchScalarGridSpec(
            num_scalar_prefetch=0,
            grid=(R // tm, N // tn, ksteps),
            in_specs=[
                pl.BlockSpec((tm, tk), lambda i, j, k: (i, k)),
                pl.BlockSpec((tk, tn), lambda i, j, k: (k, j)),
                pl.BlockSpec((1, tn), lambda i, j, k: (0, j)),
            ],
            out_specs=pl.BlockSpec((tm, tn), lambda i, j, k: (i, j)),
            scratch_shapes=[pltpu.VMEM((tm, tn), jnp.float32)],
        ),
        compiler_params=pltpu.CompilerParams(
            dimension_semantics=("parallel", "parallel", "arbitrary")),
    )(x2, W, bias)
    return out2.reshape(B, C, N)


def conv1d1x1_groups1_cl(x, W, bias):
    """x: (B, M, C), W: (M, N), bias: (1, N) -> (B, N, C).
    Computes W.T @ x[b] directly in the channel-last layout — no activation transposes."""
    B, M, C = x.shape
    Mw, N = W.shape
    assert M == Mw
    out_dtype = jnp.promote_types(x.dtype, W.dtype)
    Wt = jnp.transpose(W)          # (N, M) — tiny weight-only transpose
    bt = bias.reshape(N, 1)        # (N, 1) column bias == bias.T broadcast
    tn = _pick_tile(N, 256, 8)
    tc = _pick_tile(C, 512, 128)   # lane-dense output dim (C is the lane axis)
    tk = _pick_tile(M, 512, 128)
    ksteps = M // tk

    if ksteps == 1:
        return pl.pallas_call(
            _nc_mm_bias_single_kernel,
            out_shape=jax.ShapeDtypeStruct((B, N, C), out_dtype),
            grid_spec=pltpu.PrefetchScalarGridSpec(
                num_scalar_prefetch=0,
                grid=(B, N // tn, C // tc),
                in_specs=[
                    pl.BlockSpec((tn, M), lambda b, jn, jc: (jn, 0)),
                    pl.BlockSpec((None, M, tc), lambda b, jn, jc: (b, 0, jc)),
                    pl.BlockSpec((tn, 1), lambda b, jn, jc: (jn, 0)),
                ],
                out_specs=pl.BlockSpec((None, tn, tc),
                                       lambda b, jn, jc: (b, jn, jc)),
            ),
            compiler_params=pltpu.CompilerParams(
                dimension_semantics=("parallel", "parallel", "parallel")),
        )(Wt, x, bt)

    return pl.pallas_call(
        _nc_mm_bias_kernel,
        out_shape=jax.ShapeDtypeStruct((B, N, C), out_dtype),
        grid_spec=pltpu.PrefetchScalarGridSpec(
            num_scalar_prefetch=0,
            grid=(B, N // tn, C // tc, ksteps),
            in_specs=[
                pl.BlockSpec((tn, tk), lambda b, jn, jc, k: (jn, k)),
                pl.BlockSpec((None, tk, tc), lambda b, jn, jc, k: (b, k, jc)),
                pl.BlockSpec((tn, 1), lambda b, jn, jc, k: (jn, 0)),
            ],
            out_specs=pl.BlockSpec((None, tn, tc),
                                   lambda b, jn, jc, k: (b, jn, jc)),
            scratch_shapes=[pltpu.VMEM((tn, tc), jnp.float32)],
        ),
        compiler_params=pltpu.CompilerParams(
            dimension_semantics=("parallel", "parallel", "parallel", "arbitrary")),
    )(Wt, x, bt)


def conv1d1x1_grouped_cf(x, W, bias):
    """x: (B, G, M), W: (G, M, N), bias: (G, N) -> (B, G, N).
    Batches several groups into each grid step when the W tile fits ~4 MiB;
    falls back to one group per step otherwise.  No wrapper transposes."""
    B, G, M = x.shape
    Gw, Mw, N = W.shape
    assert G == Gw and M == Mw
    out_dtype = jnp.promote_types(x.dtype, W.dtype)
    tb = _pick_tile(B, 256, 8)
    tg = _pick_group_tile(G, M, N, jnp.dtype(W.dtype).itemsize)

    if tg:
        return pl.pallas_call(
            _group_batched_mm_bias_kernel,
            out_shape=jax.ShapeDtypeStruct((B, G, N), out_dtype),
            grid_spec=pltpu.PrefetchScalarGridSpec(
                num_scalar_prefetch=0,
                grid=(B // tb, G // tg),
                in_specs=[
                    pl.BlockSpec((tb, tg, M), lambda i, g: (i, g, 0)),
                    pl.BlockSpec((tg, M, N), lambda i, g: (g, 0, 0)),
                    pl.BlockSpec((tg, N), lambda i, g: (g, 0)),
                ],
                out_specs=pl.BlockSpec((tb, tg, N), lambda i, g: (i, g, 0)),
            ),
            compiler_params=pltpu.CompilerParams(
                dimension_semantics=("parallel", "parallel")),
        )(x, W, bias)

    # Fallback: one group per grid step (squeezed group axis, strided DMA).
    return pl.pallas_call(
        _group_mm_bias_kernel,
        out_shape=jax.ShapeDtypeStruct((B, G, N), out_dtype),
        grid_spec=pltpu.PrefetchScalarGridSpec(
            num_scalar_prefetch=0,
            grid=(B // tb, G),
            in_specs=[
                pl.BlockSpec((tb, None, M), lambda i, g: (i, g, 0)),   # -> (tb, M)
                pl.BlockSpec((None, M, N), lambda i, g: (g, 0, 0)),    # -> (M, N)
                pl.BlockSpec((1, N), lambda i, g: (g, 0)),             # -> (1, N)
            ],
            out_specs=pl.BlockSpec((tb, None, N), lambda i, g: (i, g, 0)),  # -> (tb, N)
        ),
        compiler_params=pltpu.CompilerParams(
            dimension_semantics=("parallel", "parallel")),
    )(x, W, bias)


class Conv1d1x1Pallas:
    """JAX/Pallas port of the PyTorch Conv1d1x1 module (forward pass)."""

    def __init__(self, cin, cout, groups, bias=True, cformat='channel-first',
                 key=jax.random.PRNGKey(0)):
        self.cin, self.cout, self.groups, self.cformat = cin, cout, groups, cformat
        if groups == 1:
            self.W = jax.random.normal(key, (cin, cout), jnp.float32)   # ~ torch.randn
            self.bias = jnp.zeros((1, cout), jnp.float32) if bias else None
        else:
            self.W = jax.random.normal(key, (groups, cin, cout), jnp.float32)
            self.bias = jnp.zeros((groups, cout), jnp.float32) if bias else None

    def __call__(self, x):
        b = self.bias
        if b is None:
            # PyTorch forward with bias=False is ill-defined (adds None); use zeros.
            b = (jnp.zeros((1, self.cout), self.W.dtype) if self.groups == 1
                 else jnp.zeros((self.groups, self.cout), self.W.dtype))

        if self.groups == 1:
            if self.cformat == 'channel-first':
                return conv1d1x1_groups1_cf(x, self.W, b)
            elif self.cformat == 'channel-last':
                return conv1d1x1_groups1_cl(x, self.W, b)
            raise AssertionError("unknown cformat")
        elif self.cformat == 'channel-first':
            return conv1d1x1_grouped_cf(x, self.W, b)
        elif self.cformat == 'channel-last':
            # Grouped channel-last: per-group output columns are lane-strided, which has
            # no MXU-friendly in-place formulation; transpose to channel-first around the
            # grouped kernel (only this branch keeps wrapper transposes).
            # TODO(synk): fuse the layout change into the kernel if G becomes lane-sized.
            xi = jnp.transpose(x, (0, 2, 1))            # (B, G, M)
            out = conv1d1x1_grouped_cf(xi, self.W, b)   # (B, G, N)
            return jnp.transpose(out, (0, 2, 1))        # (B, N, G)  (== + bias.T)
        raise AssertionError("unknown cformat")


# ---------------------------------- main ------------------------------------- #

if __name__ == "__main__":
    key = jax.random.PRNGKey(0)
    k1, k2, k3, k4, k5, k6 = jax.random.split(key, 6)

    B, cin, cout = 2, 16, 32
    # Default MXU precision feeds bf16 passes to the systolic array (f32 accumulate),
    # so compare against a full-f32 reference with bf16-appropriate tolerances.
    TOL = dict(atol=1e-1, rtol=5e-2)
    hi = jax.lax.Precision.HIGHEST

    # Case 1: groups == 1, channel-first. x: (B, C, cin), C = 8.
    C = 8
    m1 = Conv1d1x1Pallas(cin, cout, groups=1, key=k1)
    x1 = jax.random.normal(k2, (B, C, cin), jnp.float32)
    y1 = jax.block_until_ready(m1(x1))
    ref1 = jnp.einsum('bcm,mn->bcn', x1, m1.W, precision=hi) + m1.bias
    assert y1.shape == (B, C, cout)
    assert jnp.allclose(y1, ref1, **TOL)

    # Case 2: groups == 1, channel-last. x: (B, cin, C).
    m1b = Conv1d1x1Pallas(cin, cout, groups=1, cformat='channel-last', key=k1)
    x1b = jax.random.normal(k6, (B, cin, C), jnp.float32)
    y1b = jax.block_until_ready(m1b(x1b))
    ref1b = jnp.einsum('bmc,mn->bnc', x1b, m1b.W, precision=hi) + m1b.bias.T
    assert y1b.shape == (B, cout, C)
    assert jnp.allclose(y1b, ref1b, **TOL)

    # Case 3: groups > 1, channel-first. x: (B, G, cin), G = 4.
    G = 4
    m2 = Conv1d1x1Pallas(cin, cout, groups=G, key=k3)
    x2 = jax.random.normal(k4, (B, G, cin), jnp.float32)
    y2 = jax.block_until_ready(m2(x2))
    ref2 = jnp.einsum('bcm,cmn->bcn', x2, m2.W, precision=hi) + m2.bias
    assert y2.shape == (B, G, cout)
    assert jnp.allclose(y2, ref2, **TOL)

    # Case 4: groups > 1, channel-last. x: (B, cin, G).
    m3 = Conv1d1x1Pallas(cin, cout, groups=G, cformat='channel-last', key=k3)
    x3 = jax.random.normal(k5, (B, cin, G), jnp.float32)
    y3 = jax.block_until_ready(m3(x3))
    ref3 = jnp.einsum('bmc,cmn->bnc', x3, m3.W, precision=hi) + m3.bias.T
    assert y3.shape == (B, cout, G)
    assert jnp.allclose(y3, ref3, **TOL)

    print("KERNEL_OK")
</pallas_src>

<mosaic_0001>
module attributes {stable_mosaic.version = 11 : i64} {
  func.func @_mm_bias_single_kernel(%arg0: i32, %arg1: i32, %arg2: memref<16x16xf32, #tpu.memory_space<vmem>>, %arg3: memref<16x32xf32, #tpu.memory_space<vmem>>, %arg4: memref<1x32xf32, #tpu.memory_space<vmem>>, %arg5: memref<16x32xf32, #tpu.memory_space<vmem>>) attributes {dimension_semantics = [#tpu.dimension_semantics<parallel>, #tpu.dimension_semantics<parallel>], iteration_bounds = array<i64: 1, 1>, scalar_prefetch = 0 : i64, scratch_operands = 0 : i64, tpu.core_type = #tpu.core_type<tc>, window_params = [{transform_indices = @transform_0, window_bounds = array<i64: 16, 16>}, {transform_indices = @transform_1, window_bounds = array<i64: 16, 32>}, {transform_indices = @transform_2, window_bounds = array<i64: 1, 32>}, {transform_indices = @transform_3, window_bounds = array<i64: 16, 32>}]} {
    %c0 = arith.constant 0 : index
    %c0_0 = arith.constant 0 : index
    %0 = vector.load %arg2[%c0, %c0_0] : memref<16x16xf32, #tpu.memory_space<vmem>>, vector<16x16xf32>
    %c0_1 = arith.constant 0 : index
    %c0_2 = arith.constant 0 : index
    %1 = vector.load %arg3[%c0_1, %c0_2] : memref<16x32xf32, #tpu.memory_space<vmem>>, vector<16x32xf32>
    %cst = arith.constant dense<0.000000e+00> : vector<16x32xf32>
    %2 = tpu.matmul %0, %1, %cst {dimension_numbers = #tpu.dot_dimension_numbers<[1], [0], [0], [1], [0, 0, 1, 1], [], []>} : vector<16x16xf32>, vector<16x32xf32>, vector<16x32xf32> -> vector<16x32xf32>
    %c0_3 = arith.constant 0 : index
    %c0_4 = arith.constant 0 : index
    %3 = vector.load %arg4[%c0_3, %c0_4] : memref<1x32xf32, #tpu.memory_space<vmem>>, vector<1x32xf32>
    %4 = vector.broadcast %3 : vector<1x32xf32> to vector<16x32xf32>
    %5 = arith.addf %2, %4 : vector<16x32xf32>
    %c0_5 = arith.constant 0 : index
    %c0_6 = arith.constant 0 : index
    %6 = vector.load %arg5[%c0_5, %c0_6] : memref<16x32xf32, #tpu.memory_space<vmem>>, vector<16x32xf32>
    tpu.vector_store %arg5[%c0_5, %c0_6], %5 {strides = array<i32>} : memref<16x32xf32, #tpu.memory_space<vmem>>, vector<16x32xf32>,
    return
  }
  func.func @transform_0(%arg0: i32, %arg1: i32) -> (i32, i32) {
    %c0_i32 = arith.constant 0 : i32
    %c0_i32_0 = arith.constant 0 : i32
    return %arg0, %c0_i32 : i32, i32
  }
  func.func @transform_1(%arg0: i32, %arg1: i32) -> (i32, i32) {
    %c0_i32 = arith.constant 0 : i32
    %c0_i32_0 = arith.constant 0 : i32
    return %c0_i32, %arg1 : i32, i32
  }
  func.func @transform_2(%arg0: i32, %arg1: i32) -> (i32, i32) {
    %c0_i32 = arith.constant 0 : i32
    %c0_i32_0 = arith.constant 0 : i32
    return %c0_i32, %arg1 : i32, i32
  }
  func.func @transform_3(%arg0: i32, %arg1: i32) -> (i32, i32) {
    %c0_i32 = arith.constant 0 : i32
    return %arg0, %arg1 : i32, i32
  }
}

</mosaic_0001>

<bundles_post_ra>
// kernel: tpu_custom_call.1
= control target key start
LH: loop header
LB: loop body
LE: loop exit
PB: predicated region body
PF: predicated region fallthrough
CT: control target
= control target key end

     0   :  { %8 = vsyncpa [#allocation3], 0  ;;  %s325_s0 = inlined_call_operand.hbm [shape: f32[16,16], index: 0, kind: input, shape index: {}]   ;;  %s326_s1 = inlined_call_operand.hbm [shape: f32[16,32], index: 1, kind: input, shape index: {}]   ;;  %s327_s2 = inlined_call_operand.vmem [shape: f32[1,32], index: 2, kind: input, shape index: {}]   ;;  %s328_s3 = inlined_call_operand.hbm [shape: f32[16,32], index: 3, kind: output, shape index: {}]  }
   0x1   :  { %9 = vsyncpa [#allocation6], 0 }
   0x2   :  { %10 = vsyncpa [#allocation4], 0  ;;  %s252_s12 = smov [#allocation2]   ;;  %s180_s16 = scalar_lea.hbm %s325_s0, 256 }
   0x3   :  { %s16_s13 = sshll.u32 %s252_s12, 4  ;;  %p181_p0 = scmp.ne.s32.totalorder %s325_s0, %s180_s16  ;;  %s17_s13 = int_to_ptr.vmem [resolvable:$true] %s16_s13 }
   0x4   :  { %p184_p1 = scmp.lt.u32.totalorder %s180_s16, %s325_s0 }
   0x6   :  { %p186_p2 = pnand %p184_p1, %p181_p0 }
   0x8   :  { %189 = shalt.err (!%p186_p2)
}
   0x9   :  { %s190_s21 = scalar_lea.vmem %s17_s13, 256  ;;  %p195_p4 = scmp.lt.s32.totalorder %s17_s13, %s17_s13 }
   0xa   :  { %p191_p3 = scmp.ne.s32.totalorder %s17_s13, %s190_s21  ;;  %p196_p5 = scmp.lt.s32.totalorder %s190_s21, %s190_s21 }
   0xc   :  { %p197_p6 = por %p196_p5, %p195_p4 }
   0xe   :  { %p198_p7 = pnand %p197_p6, %p191_p3 }
  0x10   :  { %201 = shalt.err (!%p198_p7)
}
  0x11   :  { %s253_s22 = smov 128   ;;  %s254_s23 = smov 8  }
  0x12   :  { %22 = dma.hbm_to_vmem [thread:$0]  %s325_s0, 256, %s17_s13, [#allocation3], %s253_s22, %s253_s22, %s254_s23  }
  0x13   :  { %s255_s26 = smov [#allocation5]   ;;  %s202_s30 = scalar_lea.hbm %s326_s1, 256 }
  0x14   :  { %s28_s27 = sshll.u32 %s255_s26, 4  ;;  %p203_p8 = scmp.ne.s32.totalorder %s326_s1, %s202_s30  ;;  %s29_s27 = int_to_ptr.vmem [resolvable:$true] %s28_s27 }
  0x15   :  { %p206_p9 = scmp.lt.u32.totalorder %s202_s30, %s326_s1 }
  0x17   :  { %p208_p10 = pnand %p206_p9, %p203_p8 }
  0x19   :  { %211 = shalt.err (!%p208_p10)
}
  0x1a   :  { %s212_s8 = scalar_lea.vmem %s29_s27, 256  ;;  %p217_p12 = scmp.lt.s32.totalorder %s29_s27, %s29_s27 }
  0x1b   :  { %p213_p11 = scmp.ne.s32.totalorder %s29_s27, %s212_s8  ;;  %p218_p13 = scmp.lt.s32.totalorder %s212_s8, %s212_s8 }
  0x1d   :  { %p219_p0 = por %p218_p13, %p217_p12 }
  0x1f   :  { %p220_p1 = pnand %p219_p0, %p213_p11 }
  0x21   :  { %223 = shalt.err (!%p220_p1)
}
  0x22   :  { %34 = dma.hbm_to_vmem [thread:$0]  %s326_s1, 256, %s29_s27, [#allocation6], %s253_s22, %s253_s22, %s254_s23  }
  0x23   :  { %246 = dma.done.wait [#allocation3], 256  }
  0x24   :  { %247 = vsyncadd [#allocation3], 4294967040 }
  0x25   :  { %248 = dma.done.wait [#allocation6], 256  }
  0x26   :  { %249 = vsyncadd [#allocation6], 4294967040  ;;  %vm54_vm0 = vcmask 130048   ;;  %v45_v0 = vld [vmem:[#allocation5] sm:$0xff]  ;;  %v46_v1 = vld [vmem:[#allocation5 + $0x8] sm:$0xff]  ;;  %s256_s12 = smov [#allocation7]  }
  0x27   :  { %v43_v2 = vld [vmem:[#allocation2] sm:$0xff]  ;;  %v171_v3 = vpack.c.bf16 %v46_v1, %v45_v0  ;;  %v44_v4 = vld [vmem:[#allocation2 + $0x8] sm:$0xff]  ;;  %s144_s1 = sshll.u32 %s256_s12, 4  ;;  %vm136_vm1 = vcmask 261120   ;;  %s145_s1 = int_to_ptr.vmem [resolvable:$true] %s144_s1 }
  0x28   :  { %168 = vmatprep.mubr.msk.f32.mxu0 %vm54_vm0, %v43_v2  ;;  %v157_v5 = vld [vmem:[%s327_s2] ss:$0 sm:$0xff]  ;;  %s224_s13 = scalar_lea.vmem %s145_s1, 256  ;;  %p229_p3 = scmp.lt.s32.totalorder %s145_s1, %s145_s1 }
  0x29   :  { %172 = vmatprep.subr.bf16.mxu0 %v171_v3  ;;  %p225_p2 = scmp.ne.s32.totalorder %s145_s1, %s224_s13  ;;  %p230_p4 = scmp.lt.s32.totalorder %s224_s13, %s224_s13 }
  0x2a   :  { %174 = vmatpush3.bf16.msra.mxu0 %v171_v3 }
  0x2b   :  { %p231_p5 = por %p230_p4, %p229_p3 }
  0x2d   :  { %169 = vmatmul.mubr.msk.f32.vlgmr.msra.gmra.mrb[0].mxu0 %vm54_vm0, %v44_v4  ;;  %p232_p6 = pnand %p231_p5, %p225_p2 }
 0x100   :  { %v170_v6 = vpop.f32.mrb[0].mxu0 }
 0x101   :  { %v133_v7 = vadd.f32 %v170_v6, %v157_v5  ;;  %v127_v8 = vpop.f32.mrb[1].mxu0 }
 0x102   :  { %v128_v9 = vadd.f32 %v157_v5, %v127_v8 }
 0x103   :  { %138 = vst.msk [vmem:[#allocation7 + $0x8] sm:$0xff] %vm136_vm1, %v133_v7 }
 0x104   :  { %137 = vst.msk [vmem:[#allocation7] sm:$0xff] %vm136_vm1, %v128_v9 }
 0x105   :  { %235 = shalt.err (!%p232_p6)
}
 0x106   :  { %s236_s2 = scalar_lea.hbm %s328_s3, 256 }
 0x107   :  { %p237_p7 = scmp.ne.s32.totalorder %s328_s3, %s236_s2  ;;  %p240_p8 = scmp.lt.u32.totalorder %s236_s2, %s328_s3 }
 0x109   :  { %p242_p9 = pnand %p240_p8, %p237_p7 }
 0x10b   :  { %245 = shalt.err (!%p242_p9)
}
 0x10c   :  { %150 = dma.vmem_to_hbm [thread:$0]  %s145_s1, 256, %s328_s3, [#allocation4], %s253_s22, %s253_s22, %s254_s23  }
 0x10d   :  { %250 = dma.done.wait [#allocation4], 256  }
 0x10e   :  { %251 = vsyncadd [#allocation4], 4294967040 }
 0x10f   :  { %154 = vsyncpa [#allocation3], 1 }
 0x110   :  { %155 = vsyncpa [#allocation6], 1 }
 0x111   :  { %156 = vsyncpa [#allocation4], 1 }

</bundles_post_ra>
